<compile_context>
chip_gen: v7x
topology: tpu7x:2x2x1
jax: 0.10.0
libtpu: 0.0.40
codegen_flags: <defaults>
</compile_context>

<pallas_src>
from functools import partial

import jax
import jax.numpy as jnp
from jax.experimental import pallas as pl
from jax.experimental.pallas import tpu as pltpu


# ----------------------------- hardware queries ------------------------------

_DEFAULT_VMEM_BYTES = 64 * 1024 * 1024   # v7x per-TensorCore VMEM (smallest gen)


def _vmem_capacity_bytes():
    """Per-TensorCore VMEM capacity; conservative fallback if the query fails."""
    try:
        info = pltpu.get_tpu_info()
    except Exception:
        return _DEFAULT_VMEM_BYTES
    for name in ("vmem_capacity_bytes", "vmem_bytes", "vmem_size_bytes"):
        val = getattr(info, name, None)
        if val:
            return int(val)
    return _DEFAULT_VMEM_BYTES


def _num_tensorcores():
    """Best-effort TensorCore count behind one Pallas grid (megacore chips)."""
    try:
        kind = jax.devices()[0].device_kind.lower()
    except Exception:
        return 1
    return 2 if any(tag in kind for tag in ("v7", "7x", "v5p", "v4")) else 1


def _pick_batch_tile(batch, bytes_per_row, slab_target, num_tc, max_override=None):
    """Largest batch tile fitting the slab target; megacore-aware (items 6/7/8)."""
    bt = max(1, min(batch, slab_target // max(1, bytes_per_row)))
    if max_override:
        bt = max(1, min(bt, int(max_override)))
    if num_tc > 1 and batch > 1:
        # Give every TensorCore work and prefer a step count the cores split
        # evenly; single-TC chips (v5e/v6e) keep the largest possible tile.
        bt = min(bt, pl.cdiv(batch, num_tc))
        while bt > 1 and pl.cdiv(batch, bt) % num_tc != 0:
            bt -= 1
    return bt


# --------------------------------- kernels -----------------------------------

def _se_fused_kernel(x_ref, w1t_ref, b1_ref, w2t_ref, b2_ref, o_ref, *, inv_hw):
    """Fused squeeze + excitation + scale for one (bt, C, HW) batch slab."""
    x = x_ref[...]                                            # native dtype
    # Squeeze: upcast only inside the reduction (no whole-block f32 copy).
    pooled = jnp.sum(x, axis=2, dtype=jnp.float32) * inv_hw   # (bt, C) f32
    # Excitation: batched tiny matmuls, f32 accumulation on the MXU.
    h = jnp.dot(pooled, w1t_ref[...],
                preferred_element_type=jnp.float32) + b1_ref[...]   # (bt, Cmid)
    h = jnp.maximum(h, 0.0)
    s = jnp.dot(h, w2t_ref[...],
                preferred_element_type=jnp.float32) + b2_ref[...]   # (bt, C)
    gate = 1.0 / (1.0 + jnp.exp(-s))                                # sigmoid, f32
    # Scale: multiply in the input's native dtype straight into the output.
    o_ref[...] = x * gate.astype(x.dtype)[:, :, None]


def _pool_sum_kernel(x_ref, sums_ref, *, hw, hw_tile):
    """Pass 1 of the two-pass path: f32 pooled sums, HW is the reduction axis."""
    k = pl.program_id(1)

    @pl.when(k == 0)
    def _():
        sums_ref[...] = jnp.zeros_like(sums_ref)

    x = x_ref[...]                                            # (bt, C, hwt) native
    if hw % hw_tile != 0:
        # Mask the ragged tail of the last spatial tile (static-shape select).
        pos = k * hw_tile + jax.lax.broadcasted_iota(jnp.int32, (1, 1, hw_tile), 2)
        x = jnp.where(pos < hw, x, jnp.zeros_like(x))
    sums_ref[...] += jnp.sum(x, axis=2, keepdims=True, dtype=jnp.float32)


def _scale_kernel(x_ref, gate_ref, o_ref):
    """Pass 2 of the two-pass path: streaming elementwise scale (native dtype)."""
    o_ref[...] = x_ref[...] * gate_ref[...]


# --------------------------------- wrapper -----------------------------------

def se_block(x, w1, b1, w2, b2, *, force_two_pass=False, max_batch_tile=None):
    """SEBlock forward. x: (B, C, H, W). w1: (Cmid, C), b1: (Cmid,),
    w2: (C, Cmid), b2: (C,). `force_two_pass` / `max_batch_tile` are test hooks."""
    B, C, H, W = x.shape
    HW = H * W
    Cmid = w1.shape[0]
    itemsize = jnp.dtype(x.dtype).itemsize

    # Excitation params stay f32 (tiny); pre-transpose once in the wrapper.
    w1t = jnp.asarray(w1, jnp.float32).T            # (C, Cmid)
    b1r = jnp.asarray(b1, jnp.float32).reshape(1, Cmid)
    w2t = jnp.asarray(w2, jnp.float32).T            # (Cmid, C)
    b2r = jnp.asarray(b2, jnp.float32).reshape(1, C)
    weight_bytes = 4 * (2 * C * Cmid + C + Cmid)

    cap = _vmem_capacity_bytes()
    num_tc = _num_tensorcores()
    # Slab target derived from VMEM capacity: leaves room for 2x-in + 2x-out
    # double buffering, resident weights and per-vreg temps.
    slab_target = max(1 << 20, cap // 12)
    vmem_cap_limit = (cap * 4) // 5                 # never ask for > ~0.8x physical

    x_flat = x.reshape(B, C, HW)                    # natural layout, no transpose
    bytes_per_img = C * HW * itemsize

    use_two_pass = (force_two_pass
                    or bytes_per_img > slab_target
                    or 2 * weight_bytes > cap // 8)

    if not use_two_pass:
        # ------------------------- fused single pass -------------------------
        bt = _pick_batch_tile(B, bytes_per_img, slab_target, num_tc, max_batch_tile)
        nb = pl.cdiv(B, bt)                          # ragged last block allowed
        slab = bt * bytes_per_img
        vmem_limit = int(min(max(4 * slab + 2 * weight_bytes + (4 << 20), 32 << 20),
                             vmem_cap_limit))
        # TODO(synk): single-buffer the constant weight blocks
        # (pipeline_mode=pl.Buffered(1)) once that path is universally available;
        # their 2x VMEM cost is already accounted for in vmem_limit above.
        out = pl.pallas_call(
            partial(_se_fused_kernel, inv_hw=1.0 / HW),
            out_shape=jax.ShapeDtypeStruct((B, C, HW), x.dtype),
            grid_spec=pltpu.PrefetchScalarGridSpec(
                num_scalar_prefetch=0,
                grid=(nb,),
                in_specs=[
                    pl.BlockSpec((bt, C, HW), lambda i: (i, 0, 0)),
                    pl.BlockSpec((C, Cmid), lambda i: (0, 0)),
                    pl.BlockSpec((1, Cmid), lambda i: (0, 0)),
                    pl.BlockSpec((Cmid, C), lambda i: (0, 0)),
                    pl.BlockSpec((1, C), lambda i: (0, 0)),
                ],
                out_specs=pl.BlockSpec((bt, C, HW), lambda i: (i, 0, 0)),
            ),
            compiler_params=pltpu.CompilerParams(
                dimension_semantics=("parallel",),
                vmem_limit_bytes=vmem_limit),
            cost_estimate=pl.CostEstimate(
                flops=2 * B * C * HW + 4 * B * C * Cmid,
                transcendentals=B * C,
                bytes_accessed=2 * B * C * HW * itemsize + weight_bytes),
        )(x_flat, w1t, b1r, w2t, b2r)
        return out.reshape(B, C, H, W)

    # --------------------------- two-pass fallback ----------------------------
    # Spatial tile: multiple of 128 (lane-dense) unless HW itself is small.
    if HW <= 128:
        hwt = HW
    else:
        hwt = max(128, min((HW // 128) * 128,
                           (slab_target // max(1, C * itemsize)) // 128 * 128))
    bytes_per_row = C * hwt * itemsize
    bt = _pick_batch_tile(B, bytes_per_row, slab_target, num_tc, max_batch_tile)
    nb = pl.cdiv(B, bt)
    nk = pl.cdiv(HW, hwt)
    slab = bt * bytes_per_row
    vmem_limit = int(min(max(4 * slab + (4 << 20), 32 << 20), vmem_cap_limit))

    # Pass 1: f32 pooled sums; spatial axis is the ('arbitrary') reduction axis.
    sums = pl.pallas_call(
        partial(_pool_sum_kernel, hw=HW, hw_tile=hwt),
        out_shape=jax.ShapeDtypeStruct((B, C, 1), jnp.float32),
        grid_spec=pltpu.PrefetchScalarGridSpec(
            num_scalar_prefetch=0,
            grid=(nb, nk),
            in_specs=[pl.BlockSpec((bt, C, hwt), lambda b, k: (b, 0, k))],
            out_specs=pl.BlockSpec((bt, C, 1), lambda b, k: (b, 0, 0)),
        ),
        compiler_params=pltpu.CompilerParams(
            dimension_semantics=("parallel", "arbitrary"),
            vmem_limit_bytes=vmem_limit),
        cost_estimate=pl.CostEstimate(
            flops=B * C * HW, transcendentals=0,
            bytes_accessed=B * C * HW * itemsize + B * C * 4),
    )(x_flat)

    # Excitation hoisted out of the streaming kernels: tiny (B, C) math in XLA.
    pooled = sums.reshape(B, C) * (1.0 / HW)
    h = jnp.maximum(
        jnp.dot(pooled, w1t, precision=jax.lax.Precision.HIGHEST) + b1r, 0.0)
    gate = jax.nn.sigmoid(
        jnp.dot(h, w2t, precision=jax.lax.Precision.HIGHEST) + b2r)
    gate = gate.astype(x.dtype).reshape(B, C, 1)

    # Pass 2: pure streaming elementwise scale with large lane-dense blocks.
    out = pl.pallas_call(
        _scale_kernel,
        out_shape=jax.ShapeDtypeStruct((B, C, HW), x.dtype),
        grid_spec=pltpu.PrefetchScalarGridSpec(
            num_scalar_prefetch=0,
            grid=(nb, nk),
            in_specs=[pl.BlockSpec((bt, C, hwt), lambda b, k: (b, 0, k)),
                      pl.BlockSpec((bt, C, 1), lambda b, k: (b, 0, 0))],
            out_specs=pl.BlockSpec((bt, C, hwt), lambda b, k: (b, 0, k)),
        ),
        compiler_params=pltpu.CompilerParams(
            dimension_semantics=("parallel", "parallel"),
            vmem_limit_bytes=vmem_limit),
        cost_estimate=pl.CostEstimate(
            flops=B * C * HW, transcendentals=0,
            bytes_accessed=2 * B * C * HW * itemsize + B * C * itemsize),
    )(x_flat, gate)
    return out.reshape(B, C, H, W)


# -------------------------------- reference ----------------------------------

def se_block_ref(x, w1, b1, w2, b2):
    """Pure-JAX f32 reference mirroring the PyTorch forward."""
    xf = x.astype(jnp.float32)
    pooled = jnp.mean(xf, axis=(2, 3))                                  # (B, C)
    h = jnp.maximum(
        jnp.dot(pooled, w1.astype(jnp.float32).T,
                precision=jax.lax.Precision.HIGHEST) + b1, 0.0)         # (B, Cmid)
    s = jax.nn.sigmoid(
        jnp.dot(h, w2.astype(jnp.float32).T,
                precision=jax.lax.Precision.HIGHEST) + b2)              # (B, C)
    return xf * s[:, :, None, None]


# ----------------------------------- test ------------------------------------

def _run_case(name, B, C, H, W, reduction, key, dtype=jnp.float32,
              force_two_pass=False, max_batch_tile=None, atol=1e-4, rtol=1e-4):
    Cmid = max(1, C // reduction)
    kx, k1, k2, k3, k4 = jax.random.split(key, 5)
    x = jax.random.normal(kx, (B, C, H, W), dtype=dtype)
    # Conv2d 1x1 weights collapsed to 2-D.
    w1 = jax.random.normal(k1, (Cmid, C), dtype=jnp.float32) * 0.1   # fc1.weight
    b1 = jax.random.normal(k2, (Cmid,), dtype=jnp.float32) * 0.1     # fc1.bias
    w2 = jax.random.normal(k3, (C, Cmid), dtype=jnp.float32) * 0.1   # fc2.weight
    b2 = jax.random.normal(k4, (C,), dtype=jnp.float32) * 0.1        # fc2.bias

    out = jax.block_until_ready(
        se_block(x, w1, b1, w2, b2,
                 force_two_pass=force_two_pass, max_batch_tile=max_batch_tile))
    ref = se_block_ref(x, w1, b1, w2, b2)
    assert out.shape == (B, C, H, W) and out.dtype == x.dtype, f"{name}: bad shape/dtype"
    ok = jnp.allclose(out.astype(jnp.float32), ref, atol=atol, rtol=rtol)
    assert bool(ok), f"{name}: mismatch vs reference"


if __name__ == "__main__":
    key = jax.random.PRNGKey(0)
    k0, k1, k2, k3 = jax.random.split(key, 4)
    # Fused path, lane-aligned spatial (HW = 256).
    _run_case("fused_aligned", 2, 32, 16, 16, 16, k0)
    # Fused path, small unaligned spatial (7x7): natural layout + masked stores
    # instead of wrapper-side transposes.
    _run_case("fused_unaligned", 2, 128, 7, 7, 16, k1)
    # bf16 input: native-dtype streaming (no whole-block f32 temporary).
    _run_case("fused_bf16", 2, 32, 16, 16, 16, k2,
              dtype=jnp.bfloat16, atol=2e-2, rtol=2e-2)
    # Two-pass path (pool -> hoisted excitation -> scale) with ragged batch
    # and ragged spatial tiles.
    _run_case("two_pass_ragged", 3, 32, 10, 20, 16, k3,
              force_two_pass=True, max_batch_tile=2)
    print("KERNEL_OK")
</pallas_src>

<mosaic_0001>
module attributes {stable_mosaic.version = 11 : i64} {
  func.func @_se_fused_kernel(%arg0: i32, %arg1: memref<2x32x256xf32, #tpu.memory_space<vmem>>, %arg2: memref<32x2xf32, #tpu.memory_space<vmem>>, %arg3: memref<1x2xf32, #tpu.memory_space<vmem>>, %arg4: memref<2x32xf32, #tpu.memory_space<vmem>>, %arg5: memref<1x32xf32, #tpu.memory_space<vmem>>, %arg6: memref<2x32x256xf32, #tpu.memory_space<vmem>>) attributes {dimension_semantics = [#tpu.dimension_semantics<parallel>], iteration_bounds = array<i64: 1>, scalar_prefetch = 0 : i64, scratch_operands = 0 : i64, tpu.core_type = #tpu.core_type<tc>, window_params = [{transform_indices = @transform_0, window_bounds = array<i64: 2, 32, 256>}, {pipeline_mode = #tpu.pipeline_mode<synchronous>, transform_indices = @transform_1, window_bounds = array<i64: 32, 2>}, {pipeline_mode = #tpu.pipeline_mode<synchronous>, transform_indices = @transform_2, window_bounds = array<i64: 1, 2>}, {pipeline_mode = #tpu.pipeline_mode<synchronous>, transform_indices = @transform_3, window_bounds = array<i64: 2, 32>}, {pipeline_mode = #tpu.pipeline_mode<synchronous>, transform_indices = @transform_4, window_bounds = array<i64: 1, 32>}, {transform_indices = @transform_5, window_bounds = array<i64: 2, 32, 256>}]} {
    %c0 = arith.constant 0 : index
    %c0_0 = arith.constant 0 : index
    %c0_1 = arith.constant 0 : index
    %0 = vector.load %arg1[%c0, %c0_0, %c0_1] : memref<2x32x256xf32, #tpu.memory_space<vmem>>, vector<2x32x256xf32>
    %cst = arith.constant dense<0.000000e+00> : vector<2x32xf32>
    %1 = vector.multi_reduction <add>, %0, %cst [2] : vector<2x32x256xf32> to vector<2x32xf32>
    %cst_2 = arith.constant 3.906250e-03 : f32
    %2 = vector.broadcast %cst_2 : f32 to vector<2x32xf32>
    %3 = arith.mulf %1, %2 : vector<2x32xf32>
    %c0_3 = arith.constant 0 : index
    %c0_4 = arith.constant 0 : index
    %4 = vector.load %arg2[%c0_3, %c0_4] : memref<32x2xf32, #tpu.memory_space<vmem>>, vector<32x2xf32>
    %cst_5 = arith.constant dense<0.000000e+00> : vector<2x2xf32>
    %5 = tpu.matmul %3, %4, %cst_5 {dimension_numbers = #tpu.dot_dimension_numbers<[1], [0], [0], [1], [0, 0, 1, 1], [], []>} : vector<2x32xf32>, vector<32x2xf32>, vector<2x2xf32> -> vector<2x2xf32>
    %c0_6 = arith.constant 0 : index
    %c0_7 = arith.constant 0 : index
    %6 = vector.load %arg3[%c0_6, %c0_7] : memref<1x2xf32, #tpu.memory_space<vmem>>, vector<1x2xf32>
    %7 = vector.broadcast %6 : vector<1x2xf32> to vector<2x2xf32>
    %8 = arith.addf %5, %7 : vector<2x2xf32>
    %cst_8 = arith.constant 0.000000e+00 : f32
    %9 = vector.broadcast %cst_8 : f32 to vector<2x2xf32>
    %10 = arith.maximumf %8, %9 : vector<2x2xf32>
    %c0_9 = arith.constant 0 : index
    %c0_10 = arith.constant 0 : index
    %11 = vector.load %arg4[%c0_9, %c0_10] : memref<2x32xf32, #tpu.memory_space<vmem>>, vector<2x32xf32>
    %cst_11 = arith.constant dense<0.000000e+00> : vector<2x32xf32>
    %12 = tpu.matmul %10, %11, %cst_11 {dimension_numbers = #tpu.dot_dimension_numbers<[1], [0], [0], [1], [0, 0, 1, 1], [], []>} : vector<2x2xf32>, vector<2x32xf32>, vector<2x32xf32> -> vector<2x32xf32>
    %c0_12 = arith.constant 0 : index
    %c0_13 = arith.constant 0 : index
    %13 = vector.load %arg5[%c0_12, %c0_13] : memref<1x32xf32, #tpu.memory_space<vmem>>, vector<1x32xf32>
    %14 = vector.broadcast %13 : vector<1x32xf32> to vector<2x32xf32>
    %15 = arith.addf %12, %14 : vector<2x32xf32>
    %cst_14 = arith.constant 0.000000e+00 : f32
    %16 = vector.broadcast %cst_14 : f32 to vector<2x32xf32>
    %17 = arith.subf %16, %15 : vector<2x32xf32>
    %18 = math.exp %17 : vector<2x32xf32>
    %cst_15 = arith.constant 1.000000e+00 : f32
    %19 = vector.broadcast %cst_15 : f32 to vector<2x32xf32>
    %20 = arith.addf %19, %18 : vector<2x32xf32>
    %cst_16 = arith.constant 1.000000e+00 : f32
    %21 = vector.broadcast %cst_16 : f32 to vector<2x32xf32>
    %22 = arith.divf %21, %20 : vector<2x32xf32>
    %23 = vector.shape_cast %22 : vector<2x32xf32> to vector<2x32x1xf32>
    %24 = vector.broadcast %23 : vector<2x32x1xf32> to vector<2x32x256xf32>
    %25 = arith.mulf %0, %24 : vector<2x32x256xf32>
    %c0_17 = arith.constant 0 : index
    %c0_18 = arith.constant 0 : index
    %c0_19 = arith.constant 0 : index
    %26 = vector.load %arg6[%c0_17, %c0_18, %c0_19] : memref<2x32x256xf32, #tpu.memory_space<vmem>>, vector<2x32x256xf32>
    tpu.vector_store %arg6[%c0_17, %c0_18, %c0_19], %25 {strides = array<i32>} : memref<2x32x256xf32, #tpu.memory_space<vmem>>, vector<2x32x256xf32>,
    return
  }
  func.func @transform_0(%arg0: i32) -> (i32, i32, i32) {
    %c0_i32 = arith.constant 0 : i32
    %c0_i32_0 = arith.constant 0 : i32
    %c0_i32_1 = arith.constant 0 : i32
    return %arg0, %c0_i32, %c0_i32_0 : i32, i32, i32
  }
  func.func @transform_1(%arg0: i32) -> (i32, i32) {
    %c0_i32 = arith.constant 0 : i32
    %c0_i32_0 = arith.constant 0 : i32
    %c0_i32_1 = arith.constant 0 : i32
    return %c0_i32, %c0_i32_0 : i32, i32
  }
  func.func @transform_2(%arg0: i32) -> (i32, i32) {
    %c0_i32 = arith.constant 0 : i32
    %c0_i32_0 = arith.constant 0 : i32
    %c0_i32_1 = arith.constant 0 : i32
    return %c0_i32, %c0_i32_0 : i32, i32
  }
  func.func @transform_3(%arg0: i32) -> (i32, i32) {
    %c0_i32 = arith.constant 0 : i32
    %c0_i32_0 = arith.constant 0 : i32
    %c0_i32_1 = arith.constant 0 : i32
    return %c0_i32, %c0_i32_0 : i32, i32
  }
  func.func @transform_4(%arg0: i32) -> (i32, i32) {
    %c0_i32 = arith.constant 0 : i32
    %c0_i32_0 = arith.constant 0 : i32
    %c0_i32_1 = arith.constant 0 : i32
    return %c0_i32, %c0_i32_0 : i32, i32
  }
  func.func @transform_5(%arg0: i32) -> (i32, i32, i32) {
    %c0_i32 = arith.constant 0 : i32
    %c0_i32_0 = arith.constant 0 : i32
    %c0_i32_1 = arith.constant 0 : i32
    return %arg0, %c0_i32, %c0_i32_0 : i32, i32, i32
  }
}

</mosaic_0001>

<bundles_post_ra>
// kernel: tpu_custom_call.1
= control target key start
LH: loop header
LB: loop body
LE: loop exit
PB: predicated region body
PF: predicated region fallthrough
CT: control target
= control target key end

     0   :  { %10 = vsyncpa [#allocation3], 0  ;;  %s656_s0 = inlined_call_operand.hbm [shape: f32[2,32,256], index: 0, kind: input, shape index: {}]   ;;  %s657_s1 = inlined_call_operand.vmem [shape: f32[32,2], index: 1, kind: input, shape index: {}]   ;;  %s658_s2 = inlined_call_operand.vmem [shape: f32[1,2], index: 2, kind: input, shape index: {}]   ;;  %s659_s3 = inlined_call_operand.vmem [shape: f32[2,32], index: 3, kind: input, shape index: {}]   ;;  %s660_s4 = inlined_call_operand.vmem [shape: f32[1,32], index: 4, kind: input, shape index: {}]   ;;  %s661_s5 = inlined_call_operand.hbm [shape: f32[2,32,256], index: 5, kind: output, shape index: {}]  }
   0x1   :  { %11 = vsyncpa [#allocation4], 0  ;;  %s496_s18 = smov [#allocation2]   ;;  %s448_s22 = scalar_lea.hbm %s656_s0, 2048 }
   0x2   :  { %s17_s19 = sshll.u32 %s496_s18, 4  ;;  %p449_p0 = scmp.ne.s32.totalorder %s656_s0, %s448_s22  ;;  %s18_s19 = int_to_ptr.vmem [resolvable:$true] %s17_s19 }
   0x3   :  { %p452_p1 = scmp.lt.u32.totalorder %s448_s22, %s656_s0 }
   0x5   :  { %p454_p2 = pnand %p452_p1, %p449_p0 }
   0x7   :  { %457 = shalt.err (!%p454_p2)
}
   0x8   :  { %s458_s27 = scalar_lea.vmem %s18_s19, 2048  ;;  %p463_p4 = scmp.lt.s32.totalorder %s18_s19, %s18_s19 }
   0x9   :  { %p459_p3 = scmp.ne.s32.totalorder %s18_s19, %s458_s27  ;;  %p464_p5 = scmp.lt.s32.totalorder %s458_s27, %s458_s27 }
   0xb   :  { %p465_p6 = por %p464_p5, %p463_p4 }
   0xd   :  { %p466_p7 = pnand %p465_p6, %p459_p3 }
   0xf   :  { %469 = shalt.err (!%p466_p7)
}
  0x10   :  { %s497_s28 = smov 256   ;;  %s498_s29 = smov 16  }
  0x11   :  { %23 = dma.hbm_to_vmem [thread:$0]  %s656_s0, 2048, %s18_s19, [#allocation3], %s497_s28, %s497_s28, %s498_s29  }
  0x12   :  { %492 = dma.done.wait [#allocation3], 2048  }
  0x13   :  { %493 = vsyncadd [#allocation3], 4294965248  ;;  %v548_v0 = vld [vmem:[#allocation2 + $0x40] sm:$0xff]  ;;  %v550_v1 = vld [vmem:[#allocation2 + $0x48] sm:$0xff]  ;;  %v499_v27 = vmov 0.0|0.0   ;;  %vm500_vm0 = vmmov 0   ;;  %v102_v32 = vlaneseq }
  0x14   :  { %v552_v2 = vld [vmem:[#allocation2] sm:$0xff]  ;;  %v63_v3 = vadd.f32 %v550_v1, %v548_v0  ;;  %v556_v4 = vld [vmem:[#allocation2 + $0x8] sm:$0xff]  ;;  %v558_v5 = vld [vmem:[#allocation2 + $0x50] sm:$0xff]  ;;  %431 = vmatprep.subr.bf16.mxu0 %v499_v27  ;;  %v501_v31 = vmov 0.0   ;;  %vm113_vm1 = vcmask 130112   ;;  %vm120_vm2 = vcmask 195712  }
  0x15   :  { %v560_v6 = vld [vmem:[#allocation2 + $0x58] sm:$0xff]  ;;  %v51_v7 = vadd.f32 %v556_v4, %v552_v2  ;;  %v564_v8 = vld [vmem:[#allocation2 + $0x10] sm:$0xff]  ;;  %v572_v12 = vld [vmem:[#allocation2 + $0x60] sm:$0xff]  ;;  %423 = vmatprep.mubr.msk.f32.mxu0 %vm500_vm0, %v501_v31  ;;  %426 = vmatprep.subr.mxu1 %v501_v31  ;;  %v103_v34 = vand.u32 127, %v102_v32  ;;  %v608_v39 = vshrl.u32 %v102_v32, 7  ;;  %vm127_vm3 = vcmask 261312  }
  0x16   :  { %v566_v9 = vld [vmem:[#allocation2 + $0x18] sm:$0xff]  ;;  %64 = vadd.xlane.f32.xlu1 %v63_v3  ;;  %v66_v10 = vadd.f32 %v560_v6, %v558_v5  ;;  %v574_v13 = vld [vmem:[#allocation2 + $0x68] sm:$0xff]  ;;  %v576_v14 = vld [vmem:[#allocation2 + $0x20] sm:$0xff]  ;;  %428 = vmatprep.mubr.msk.f32.mxu1 %vm500_vm0, %v501_v31  ;;  %vm148_vm4 = vcmask 1041409   ;;  %vm150_vm5 = vcmask 261120   ;;  %vm236_vm6 = vcmask 1041408  }
  0x17   :  { %52 = vadd.xlane.f32.xlu0 %v51_v7  ;;  %v54_v11 = vadd.f32 %v566_v9, %v564_v8  ;;  %v578_v15 = vld [vmem:[#allocation2 + $0x28] sm:$0xff]  ;;  %v69_v16 = vadd.f32 %v574_v13, %v572_v12  ;;  %v584_v18 = vld [vmem:[#allocation2 + $0x70] sm:$0xff]  ;;  %v586_v19 = vld [vmem:[#allocation2 + $0x78] sm:$0xff]  ;;  %v108_v36 = vadd.s32 4294967288, %v103_v34  ;;  %v115_v38 = vadd.s32 4294967280, %v103_v34 }
  0x18   :  { %v57_v17 = vadd.f32 %v578_v15, %v576_v14  ;;  %v588_v20 = vld [vmem:[#allocation2 + $0x30] sm:$0xff]  ;;  %v590_v21 = vld [vmem:[#allocation2 + $0x38] sm:$0xff]  ;;  %v72_v22 = vadd.f32 %v586_v19, %v584_v18  ;;  %v83_v24 = vld [vmem:[%s657_s1] sm:$0xff]  ;;  %v122_v43 = vadd.s32 4294967272, %v103_v34  ;;  %v106_v47 = vsub.s32 %v103_v34, %v608_v39 }
  0x19   :  { %v60_v23 = vadd.f32 %v590_v21, %v588_v20  ;;  %v84_v25 = vld [vmem:[%s657_s1 + $0x8] sm:$0xff]  ;;  %v85_v28 = vld [vmem:[%s657_s1 + $0x10] sm:$0xff]  ;;  %v86_v29 = vld [vmem:[%s657_s1 + $0x18] sm:$0xff]  ;;  %v111_v41 = vsub.s32 %v108_v36, %v608_v39  ;;  %v118_v45 = vsub.s32 %v115_v38, %v608_v39  ;;  %vm232_vm7 = vcmask 15360  }
  0x1a   :  { %67 = vadd.xlane.f32.xlu1 %v66_v10  ;;  %v432_v26 = vpack.c.bf16 %v84_v25, %v83_v24  ;;  %v435_v30 = vpack.c.bf16 %v86_v29, %v85_v28  ;;  %v125_v54 = vsub.s32 %v122_v43, %v608_v39  ;;  %v224_v25 = vld [vmem:[%s659_s3] sm:$0x3]  ;;  %v337_v43 = vsub.s32 1, %v608_v39 }
  0x1b   :  { %55 = vadd.xlane.f32.xlu0 %v54_v11  ;;  %427 = vmatpush3.msk.msra.mxu1 %vm236_vm6, %v224_v25  ;;  %v405_v31 = vld [vmem:[%s660_s4] ss:$0 sm:$0xff] }
  0x1c   :  { %433 = vmatpush3.bf16.msra.mxu0 %v432_v26  ;;  %v403_v26 = vld [vmem:[%s658_s2] ss:$0 sm:$0xff]  ;;  %s502_s2 = smov [#allocation5]  }
  0x1d   :  { %434 = vmatprep.subr.bf16.mxu0 %v499_v27  ;;  %s391_s3 = sshll.u32 %s502_s2, 4  ;;  %s392_s3 = int_to_ptr.vmem [resolvable:$true] %s391_s3 }
  0x1e   :  { %70 = vadd.xlane.f32.xlu1 %v69_v16  ;;  %s470_s4 = scalar_lea.vmem %s392_s3, 2048  ;;  %p475_p9 = scmp.lt.s32.totalorder %s392_s3, %s392_s3 }
  0x1f   :  { %58 = vadd.xlane.f32.xlu0 %v57_v17  ;;  %p471_p8 = scmp.ne.s32.totalorder %s392_s3, %s470_s4  ;;  %p476_p10 = scmp.lt.s32.totalorder %s470_s4, %s470_s4 }
  0x20   :  { %436 = vmatpush3.bf16.msra.mxu0 %v435_v30 }
  0x21   :  { %p477_p11 = por %p476_p10, %p475_p9 }
  0x22   :  { %73 = vadd.xlane.f32.xlu1 %v72_v22 }
  0x23   :  { %61 = vadd.xlane.f32.xlu0 %v60_v23  ;;  %p478_p12 = pnand %p477_p11, %p471_p8 }
  0xa3   :  { %v65_v33 = vpop.xlane.xlu1 %64 }
  0xa4   :  { %v53_v35 = vpop.xlane.xlu0 %52  ;;  %v79_v48 = vmul.f32 0.00390625, %v65_v33 }
  0xa5   :  { %v75_v51 = vmul.f32 0.00390625, %v53_v35 }
  0xa6   :  { %v132_v58 = vrot.slane %v79_v48, %v106_v47 }
  0xa7   :  { %v68_v37 = vpop.xlane.xlu1 %67  ;;  %v107_v62 = vrot.slane %v75_v51, %v106_v47 }
  0xa8   :  { %v56_v40 = vpop.xlane.xlu0 %55  ;;  %v80_v42 = vmul.f32 0.00390625, %v68_v37 }
  0xa9   :  { %v76_v44 = vmul.f32 0.00390625, %v56_v40  ;;  %v318_v40 = vsub.s32 0, %v608_v39 }
  0xaa   :  { %v136_v53 = vrot.slane %v80_v42, %v111_v41 }
  0xab   :  { %v71_v46 = vpop.xlane.xlu1 %70  ;;  %v112_v55 = vrot.slane %v76_v44, %v111_v41 }
  0xac   :  { %v81_v49 = vmul.f32 0.00390625, %v71_v46  ;;  %v59_v50 = vpop.xlane.xlu0 %58  ;;  %v137_v3 = vsel %vm113_vm1, %v136_v53, %v132_v58 }
  0xad   :  { %v77_v52 = vmul.f32 0.00390625, %v59_v50  ;;  %v114_v10 = vsel %vm113_vm1, %v112_v55, %v107_v62 }
  0xae   :  { %v141_v56 = vrot.slane %v81_v49, %v118_v45 }
  0xaf   :  { %v74_v57 = vpop.xlane.xlu1 %73  ;;  %v119_v59 = vrot.slane %v77_v52, %v118_v45 }
  0xb0   :  { %v82_v60 = vmul.f32 0.00390625, %v74_v57  ;;  %v62_v61 = vpop.xlane.xlu0 %61  ;;  %v142_v11 = vsel %vm120_vm2, %v141_v56, %v137_v3 }
  0xb1   :  { %v78_v63 = vmul.f32 0.00390625, %v62_v61  ;;  %v121_v17 = vsel %vm120_vm2, %v119_v59, %v114_v10 }
  0xb2   :  { %v146_v7 = vrot.slane %v82_v60, %v125_v54 }
  0xb3   :  { %v126_v16 = vrot.slane %v78_v63, %v125_v54 }
  0xb4   :  { %v147_v22 = vsel %vm127_vm3, %v146_v7, %v142_v11 }
  0xb5   :  { %v128_v23 = vsel %vm127_vm3, %v126_v16, %v121_v17 }
  0xb6   :  { %v149_v24 = vsel %vm148_vm4, %v147_v22, %v128_v23 }
  0xb7   :  { %424 = vmatmul.mubr.msk.f32.vlgmr.msra.gmra.mrb[0].mxu0 %vm150_vm5, %v149_v24 }
 0x18a   :  { %v219_v27 = vpop.f32.mrb[0].mxu0 }
 0x18b   :  { %v220_v28 = vadd.f32 %v403_v26, %v219_v27  ;;  %v425_v29 = vpop.f32.mrb[1].mxu0 }
 0x18d   :  { %v223_v30 = vmax.f32 %v220_v28, 0.0 }
 0x18f   :  { %429 = vmatmul.mubr.msk.f32.vlgmr.msra.gmra.mrb[0].mxu1 %vm232_vm7, %v223_v30 }
 0x262   :  { %v306_v32 = vpop.f32.mrb[0].mxu1 }
 0x263   :  { %v307_v33 = vadd.f32 %v405_v31, %v306_v32  ;;  %v430_v34 = vpop.f32.mrb[1].mxu1 }
 0x265   :  { %v310_v35 = vsub.f32 0.0, %v307_v33 }
 0x267   :  { %v311_v36 = vmul.f32 1.442695, %v310_v35 }
 0x269   :  { %444 = vpow2.f32 %v311_v36 }
 0x273   :  { %v445_v37 = vpop.eup %444 }
 0x274   :  { %v313_v38 = vadd.f32 1.0, %v445_v37 }
 0x276   :  { %446 = vrcp.f32 %v313_v38 }
 0x280   :  { %v447_v41 = vpop.eup %446 }
 0x281   :  { %v319_v42 = vrot.slane %v447_v41, %v318_v40  ;;  %v338_v44 = vrot.slane %v447_v41, %v337_v43 }
 0x283   :  { %325 = vbcast.lane.b32.xlu1 %v319_v42, 264  ;;  %321 = vbcast.lane.b32.xlu0 %v319_v42, 256 }
 0x287   :  { %329 = vbcast.lane.b32.xlu1 %v319_v42, 272  ;;  %340 = vbcast.lane.b32.xlu0 %v338_v44, 256 }
 0x28b   :  { %333 = vbcast.lane.b32.xlu1 %v319_v42, 280  ;;  %348 = vbcast.lane.b32.xlu0 %v338_v44, 272 }
 0x28f   :  { %344 = vbcast.lane.b32.xlu1 %v338_v44, 264 }
 0x293   :  { %352 = vbcast.lane.b32.xlu1 %v338_v44, 280 }
 0x2f5   :  { %v326_v45 = vpop.permute.xlu1 %325  ;;  %v322_v46 = vpop.permute.xlu0 %321 }
 0x2f6   :  { %v356_v47 = vmul.f32 %v326_v45, %v564_v8  ;;  %v357_v48 = vmul.f32 %v326_v45, %v566_v9  ;;  %v354_v49 = vmul.f32 %v322_v46, %v552_v2  ;;  %v355_v50 = vmul.f32 %v322_v46, %v556_v4 }
 0x2f8   :  { %372 = vst [vmem:[#allocation5 + $0x10] sm:$0xff] %v356_v47  ;;  %373 = vst [vmem:[#allocation5 + $0x18] sm:$0xff] %v357_v48 }
 0x2f9   :  { %370 = vst [vmem:[#allocation5] sm:$0xff] %v354_v49  ;;  %371 = vst [vmem:[#allocation5 + $0x8] sm:$0xff] %v355_v50  ;;  %v330_v39 = vpop.permute.xlu1 %329  ;;  %v341_v51 = vpop.permute.xlu0 %340 }
 0x2fa   :  { %v358_v52 = vmul.f32 %v330_v39, %v576_v14  ;;  %v359_v53 = vmul.f32 %v330_v39, %v578_v15  ;;  %v362_v54 = vmul.f32 %v341_v51, %v548_v0  ;;  %v363_v8 = vmul.f32 %v341_v51, %v550_v1 }
 0x2fc   :  { %374 = vst [vmem:[#allocation5 + $0x20] sm:$0xff] %v358_v52  ;;  %375 = vst [vmem:[#allocation5 + $0x28] sm:$0xff] %v359_v53 }
 0x2fd   :  { %378 = vst [vmem:[#allocation5 + $0x40] sm:$0xff] %v362_v54  ;;  %379 = vst [vmem:[#allocation5 + $0x48] sm:$0xff] %v363_v8  ;;  %v334_v2 = vpop.permute.xlu1 %333  ;;  %v349_v4 = vpop.permute.xlu0 %348 }
 0x2fe   :  { %v360_v9 = vmul.f32 %v334_v2, %v588_v20  ;;  %v361_v55 = vmul.f32 %v334_v2, %v590_v21  ;;  %v366_v56 = vmul.f32 %v349_v4, %v572_v12  ;;  %v367_v14 = vmul.f32 %v349_v4, %v574_v13 }
 0x300   :  { %376 = vst [vmem:[#allocation5 + $0x30] sm:$0xff] %v360_v9  ;;  %377 = vst [vmem:[#allocation5 + $0x38] sm:$0xff] %v361_v55 }
 0x301   :  { %382 = vst [vmem:[#allocation5 + $0x60] sm:$0xff] %v366_v56  ;;  %383 = vst [vmem:[#allocation5 + $0x68] sm:$0xff] %v367_v14  ;;  %v345_v0 = vpop.permute.xlu1 %344 }
 0x302   :  { %v364_v1 = vmul.f32 %v345_v0, %v558_v5  ;;  %v365_v15 = vmul.f32 %v345_v0, %v560_v6 }
 0x304   :  { %380 = vst [vmem:[#allocation5 + $0x50] sm:$0xff] %v364_v1  ;;  %381 = vst [vmem:[#allocation5 + $0x58] sm:$0xff] %v365_v15 }
 0x305   :  { %v353_v20 = vpop.permute.xlu1 %352 }
 0x306   :  { %v368_v21 = vmul.f32 %v353_v20, %v584_v18  ;;  %v369_v12 = vmul.f32 %v353_v20, %v586_v19 }
 0x308   :  { %384 = vst [vmem:[#allocation5 + $0x70] sm:$0xff] %v368_v21  ;;  %385 = vst [vmem:[#allocation5 + $0x78] sm:$0xff] %v369_v12 }
 0x309   :  { %481 = shalt.err (!%p478_p12)
}
 0x30a   :  { %s482_s21 = scalar_lea.hbm %s661_s5, 2048 }
 0x30b   :  { %p483_p13 = scmp.ne.s32.totalorder %s661_s5, %s482_s21  ;;  %p486_p0 = scmp.lt.u32.totalorder %s482_s21, %s661_s5 }
 0x30d   :  { %p488_p1 = pnand %p486_p0, %p483_p13 }
 0x30f   :  { %491 = shalt.err (!%p488_p1)
}
 0x310   :  { %397 = dma.vmem_to_hbm [thread:$0]  %s392_s3, 2048, %s661_s5, [#allocation4], %s497_s28, %s497_s28, %s498_s29  }
 0x311   :  { %494 = dma.done.wait [#allocation4], 2048  }
 0x312   :  { %495 = vsyncadd [#allocation4], 4294965248 }
 0x313   :  { %401 = vsyncpa [#allocation3], 1 }
 0x314   :  { %402 = vsyncpa [#allocation4], 1 }

</bundles_post_ra>
